<compile_context>
chip_gen: v6e
topology: v6e:2x2x1
jax: 0.10.0
libtpu: 0.0.40
codegen_flags: <defaults>
</compile_context>

<pallas_src>
import jax
import jax.numpy as jnp
from jax.experimental import pallas as pl
from jax.experimental.pallas import tpu as pltpu


def _ibm_attention_kernel(out_ref, ctx_ref, wm_ref, wo_ref, b_ref,
                          attended_ref, attn_ref):
    # out_ref:      (Bt, Lot, D)  decoder output block
    # ctx_ref:      (Bt, Li,  D)  encoder context block
    # wm_ref:       (D, D)        W[:, :D].T  (applied to mix)
    # wo_ref:       (D, D)        W[:, D:].T  (applied to decoder output)
    # b_ref:        (1, D)        bias (f32)
    # attended_ref: (Bt, Lot, D)
    # attn_ref:     (Bt, Lot, Li)
    q = out_ref[...]
    c = ctx_ref[...]
    bt, lot, d = q.shape

    # scores = bmm(output, context^T), expressed as a contraction over the
    # last dims -> feeds the MXU directly, no materialized transpose.
    scores = jnp.einsum("bod,bid->boi", q, c,
                        preferred_element_type=jnp.float32)

    # Numerically stable softmax over input_len, all in f32.
    # Exact divide (no approx reciprocal) for parity with the reference.
    m = jnp.max(scores, axis=-1, keepdims=True)
    e = jnp.exp(scores - m)
    attn = e / jnp.sum(e, axis=-1, keepdims=True)

    # mix = bmm(attn, context); accumulation stays f32 via
    # preferred_element_type even when operands are bf16.
    mix = jnp.einsum("boi,bid->bod", attn.astype(c.dtype), c,
                     preferred_element_type=jnp.float32)

    # linear_out(cat([mix, output])) + tanh, computed as two large flattened
    # (Bt*Lot, D) x (D, D) matmuls.  block_lo is a multiple of 8 (or == Lo),
    # so these reshapes are layout-preserving.
    mix_flat = mix.astype(wm_ref.dtype).reshape(bt * lot, d)
    q_flat = q.reshape(bt * lot, d)
    lin = (jnp.dot(mix_flat, wm_ref[...], preferred_element_type=jnp.float32)
           + jnp.dot(q_flat, wo_ref[...], preferred_element_type=jnp.float32)
           + b_ref[...])
    attended_ref[...] = jnp.tanh(lin).reshape(bt, lot, d).astype(attended_ref.dtype)
    attn_ref[...] = attn.astype(attn_ref.dtype)


def _vmem_budget_bytes():
    """Generation-aware per-step working-set budget and the Mosaic VMEM limit."""
    try:
        cap = int(pltpu.get_tpu_info().vmem_capacity_bytes)
    except Exception:  # no TPU info available (e.g. interpret mode) -> v7x-safe default
        cap = 64 * 1024 * 1024
    limit = min(int(cap * 0.75), 96 * 1024 * 1024)
    budget = int(limit * 0.6)  # leave headroom for Mosaic internal scratch / spills
    return budget, limit


def _pick_blocks(B, Lo, Li, D, in_itemsize, out_itemsize, w_itemsize, budget):
    """Pick (block_b, block_lo) maximizing per-step work under the VMEM budget."""
    lo_divs = [d for d in range(1, Lo + 1) if Lo % d == 0]
    # Lo tiles must be a multiple of 8 (sublane) so the flatten to
    # (Bt*Lot, D) is free; cap rows per step at 512.  Full Lo is always valid.
    lo_cands = [d for d in lo_divs if d % 8 == 0 and d <= 512] or [Lo]
    b_divs = [d for d in range(1, B + 1) if B % d == 0]

    def vmem_bytes(bb, blo):
        # BlockSpec-managed I/O (double-buffered) ...
        io = (2 * bb * (blo * D + Li * D) * in_itemsize
              + 2 * bb * blo * (D + Li) * out_itemsize)
        weights = 2 * (2 * D * D + D) * w_itemsize
        # ... plus the f32 intermediates inside one step:
        # scores + exp + attn, mix, flattened linear operands / result.
        inter = (3 * bb * blo * Li + 4 * bb * blo * D) * 4
        return io + weights + inter

    best = (1, min(lo_cands))
    for bb in b_divs:
        for blo in lo_cands:
            if vmem_bytes(bb, blo) <= budget and bb * blo > best[0] * best[1]:
                best = (bb, blo)
    block_b, block_lo = best

    # Prefer >= 2 (parallel) grid steps for 2-TensorCore parts by splitting the
    # Lo axis (keeps MXU row fill / block_b intact); on single-TC chips this
    # costs only one extra ~0.35us grid step.
    if B // block_b == 1 and Lo // block_lo == 1:
        smaller = [d for d in lo_cands if d < block_lo]
        if smaller:
            block_lo = max(smaller)
    return block_b, block_lo


def ibm_attention(output, context, weight, bias, *,
                  block_b=None, block_lo=None, matmul_dtype=None):
    """output: (B, Lo, D), context: (B, Li, D), weight: (D, 2D), bias: (D,)."""
    B, Lo, D = output.shape
    Bc, Li, Dc = context.shape
    assert (Bc, Dc) == (B, D), (output.shape, context.shape)
    assert weight.shape == (D, 2 * D) and bias.shape == (D,)

    out_dtype = output.dtype
    mm_dtype = jnp.dtype(matmul_dtype) if matmul_dtype is not None else jnp.dtype(out_dtype)
    if jnp.dtype(output.dtype) != mm_dtype:
        output = output.astype(mm_dtype)
    if jnp.dtype(context.dtype) != mm_dtype:
        context = context.astype(mm_dtype)

    w_mix_t = weight[:, :D].T.astype(mm_dtype)    # (D, D), applied to mix
    w_out_t = weight[:, D:].T.astype(mm_dtype)    # (D, D), applied to output
    b2 = bias.reshape(1, D).astype(jnp.float32)   # bias added in f32

    budget, vmem_limit = _vmem_budget_bytes()
    in_isz = jnp.dtype(mm_dtype).itemsize
    out_isz = jnp.dtype(out_dtype).itemsize
    auto_bb, auto_blo = _pick_blocks(B, Lo, Li, D, in_isz, out_isz, in_isz, budget)
    block_b = auto_bb if block_b is None else block_b
    block_lo = auto_blo if block_lo is None else block_lo
    assert B % block_b == 0 and Lo % block_lo == 0, (B, Lo, block_b, block_lo)

    out_shapes = (
        jax.ShapeDtypeStruct((B, Lo, D), out_dtype),
        jax.ShapeDtypeStruct((B, Lo, Li), out_dtype),
    )

    grid_spec = pltpu.PrefetchScalarGridSpec(
        num_scalar_prefetch=0,
        grid=(B // block_b, Lo // block_lo),
        in_specs=[
            pl.BlockSpec((block_b, block_lo, D), lambda b, q: (b, q, 0)),
            pl.BlockSpec((block_b, Li, D), lambda b, q: (b, 0, 0)),
            pl.BlockSpec((D, D), lambda b, q: (0, 0)),
            pl.BlockSpec((D, D), lambda b, q: (0, 0)),
            pl.BlockSpec((1, D), lambda b, q: (0, 0)),
        ],
        out_specs=[
            pl.BlockSpec((block_b, block_lo, D), lambda b, q: (b, q, 0)),
            pl.BlockSpec((block_b, block_lo, Li), lambda b, q: (b, q, 0)),
        ],
    )

    # Advisory cost estimate so XLA schedules surrounding ops around the call.
    flops = 2 * B * Lo * (2 * Li * D + 2 * D * D)
    transcendentals = B * Lo * (Li + D)          # exp per score + tanh per out
    bytes_accessed = ((B * Lo * D + B * Li * D) * in_isz
                      + (2 * D * D + D) * in_isz
                      + (B * Lo * D + B * Lo * Li) * out_isz)

    return pl.pallas_call(
        _ibm_attention_kernel,
        out_shape=out_shapes,
        grid_spec=grid_spec,
        compiler_params=pltpu.CompilerParams(
            dimension_semantics=("parallel", "parallel"),
            vmem_limit_bytes=vmem_limit),
        cost_estimate=pl.CostEstimate(
            flops=flops, transcendentals=transcendentals,
            bytes_accessed=bytes_accessed),
    )(output, context, w_mix_t, w_out_t, b2)


def _reference(output, context, weight, bias):
    # Pure-JAX reference matching the PyTorch forward.
    scores = jnp.einsum("bod,bid->boi", output, context)
    attn = jax.nn.softmax(scores, axis=-1)
    mix = jnp.einsum("boi,bid->bod", attn, context)
    combined = jnp.concatenate([mix, output], axis=-1)
    out = jnp.tanh(combined @ weight.T + bias)
    return out, attn


if __name__ == "__main__":
    B, Lo, Li, D = 4, 8, 8, 32  # batch, output_len, input_len, dim

    key = jax.random.PRNGKey(0)
    k1, k2, k3, k4 = jax.random.split(key, 4)

    output = jax.random.normal(k1, (B, Lo, D), dtype=jnp.float32)
    context = jax.random.normal(k2, (B, Li, D), dtype=jnp.float32)

    # nn.Linear(dim*2, dim) default init: U(-1/sqrt(fan_in), 1/sqrt(fan_in))
    bound = 1.0 / (2 * D) ** 0.5
    weight = jax.random.uniform(k3, (D, 2 * D), jnp.float32, -bound, bound)
    bias = jax.random.uniform(k4, (D,), jnp.float32, -bound, bound)

    attended, attn = ibm_attention(output, context, weight, bias)
    jax.block_until_ready((attended, attn))

    # Reference evaluated at highest matmul precision so it is not itself
    # degraded by XLA:TPU's default (bf16-pass) f32 dot precision.
    with jax.default_matmul_precision("highest"):
        ref_out, ref_attn = _reference(output, context, weight, bias)
        ref_out, ref_attn = jax.block_until_ready((ref_out, ref_attn))

    # With the exact-divide softmax the typical error is ~1e-6; the margin
    # below only covers TPU generations whose f32 MXU matmuls are emulated
    # with reduced-precision bf16 passes plus transcendental ULP differences.
    err_out = float(jnp.max(jnp.abs(attended - ref_out)))
    err_attn = float(jnp.max(jnp.abs(attn - ref_attn)))
    assert err_out < 5e-3, err_out
    assert err_attn < 5e-3, err_attn

    print("KERNEL_OK")
</pallas_src>

<mosaic_0001>
module attributes {stable_mosaic.version = 11 : i64} {
  func.func @_ibm_attention_kernel(%arg0: i32, %arg1: i32, %arg2: memref<4x8x32xf32, #tpu.memory_space<vmem>>, %arg3: memref<4x8x32xf32, #tpu.memory_space<vmem>>, %arg4: memref<32x32xf32, #tpu.memory_space<vmem>>, %arg5: memref<32x32xf32, #tpu.memory_space<vmem>>, %arg6: memref<1x32xf32, #tpu.memory_space<vmem>>, %arg7: memref<4x8x32xf32, #tpu.memory_space<vmem>>, %arg8: memref<4x8x8xf32, #tpu.memory_space<vmem>>) attributes {dimension_semantics = [#tpu.dimension_semantics<parallel>, #tpu.dimension_semantics<parallel>], iteration_bounds = array<i64: 1, 1>, scalar_prefetch = 0 : i64, scratch_operands = 0 : i64, tpu.core_type = #tpu.core_type<tc>, window_params = [{transform_indices = @transform_0, window_bounds = array<i64: 4, 8, 32>}, {transform_indices = @transform_1, window_bounds = array<i64: 4, 8, 32>}, {pipeline_mode = #tpu.pipeline_mode<synchronous>, transform_indices = @transform_2, window_bounds = array<i64: 32, 32>}, {pipeline_mode = #tpu.pipeline_mode<synchronous>, transform_indices = @transform_3, window_bounds = array<i64: 32, 32>}, {pipeline_mode = #tpu.pipeline_mode<synchronous>, transform_indices = @transform_4, window_bounds = array<i64: 1, 32>}, {transform_indices = @transform_5, window_bounds = array<i64: 4, 8, 32>}, {transform_indices = @transform_6, window_bounds = array<i64: 4, 8, 8>}]} {
    %c0 = arith.constant 0 : index
    %c0_0 = arith.constant 0 : index
    %c0_1 = arith.constant 0 : index
    %0 = vector.load %arg2[%c0, %c0_0, %c0_1] : memref<4x8x32xf32, #tpu.memory_space<vmem>>, vector<4x8x32xf32>
    %c0_2 = arith.constant 0 : index
    %c0_3 = arith.constant 0 : index
    %c0_4 = arith.constant 0 : index
    %1 = vector.load %arg3[%c0_2, %c0_3, %c0_4] : memref<4x8x32xf32, #tpu.memory_space<vmem>>, vector<4x8x32xf32>
    "tpu.trace_start"() <{level = 10 : i32, message = "bod,bid->boi"}> : () -> ()
    %cst = arith.constant dense<0.000000e+00> : vector<4x8x8xf32>
    %2 = tpu.matmul %0, %1, %cst {dimension_numbers = #tpu.dot_dimension_numbers<[2], [2], [1], [1], [0, 0, 0, 1, 1, 1], [0], [0]>} : vector<4x8x32xf32>, vector<4x8x32xf32>, vector<4x8x8xf32> -> vector<4x8x8xf32>
    "tpu.trace_stop"() : () -> ()
    %cst_5 = arith.constant dense<0xFF800000> : vector<4x8xf32>
    %3 = vector.multi_reduction <maximumf>, %2, %cst_5 [2] : vector<4x8x8xf32> to vector<4x8xf32>
    %4 = vector.shape_cast %3 : vector<4x8xf32> to vector<4x8x1xf32>
    %5 = vector.broadcast %4 : vector<4x8x1xf32> to vector<4x8x8xf32>
    %6 = arith.subf %2, %5 : vector<4x8x8xf32>
    %7 = math.exp %6 : vector<4x8x8xf32>
    %cst_6 = arith.constant dense<0.000000e+00> : vector<4x8xf32>
    %8 = vector.multi_reduction <add>, %7, %cst_6 [2] : vector<4x8x8xf32> to vector<4x8xf32>
    %9 = vector.shape_cast %8 : vector<4x8xf32> to vector<4x8x1xf32>
    %10 = vector.broadcast %9 : vector<4x8x1xf32> to vector<4x8x8xf32>
    %11 = arith.divf %7, %10 : vector<4x8x8xf32>
    "tpu.trace_start"() <{level = 10 : i32, message = "boi,bid->bod"}> : () -> ()
    %cst_7 = arith.constant dense<0.000000e+00> : vector<4x8x32xf32>
    %12 = tpu.matmul %11, %1, %cst_7 {dimension_numbers = #tpu.dot_dimension_numbers<[2], [1], [1], [2], [0, 0, 0, 1, 1, 2], [0], [0]>} : vector<4x8x8xf32>, vector<4x8x32xf32>, vector<4x8x32xf32> -> vector<4x8x32xf32>
    "tpu.trace_stop"() : () -> ()
    %13 = vector.shape_cast %12 : vector<4x8x32xf32> to vector<32x32xf32>
    %14 = vector.shape_cast %0 : vector<4x8x32xf32> to vector<32x32xf32>
    %c0_8 = arith.constant 0 : index
    %c0_9 = arith.constant 0 : index
    %15 = vector.load %arg4[%c0_8, %c0_9] : memref<32x32xf32, #tpu.memory_space<vmem>>, vector<32x32xf32>
    %cst_10 = arith.constant dense<0.000000e+00> : vector<32x32xf32>
    %16 = tpu.matmul %13, %15, %cst_10 {dimension_numbers = #tpu.dot_dimension_numbers<[1], [0], [0], [1], [0, 0, 1, 1], [], []>} : vector<32x32xf32>, vector<32x32xf32>, vector<32x32xf32> -> vector<32x32xf32>
    %c0_11 = arith.constant 0 : index
    %c0_12 = arith.constant 0 : index
    %17 = vector.load %arg5[%c0_11, %c0_12] : memref<32x32xf32, #tpu.memory_space<vmem>>, vector<32x32xf32>
    %cst_13 = arith.constant dense<0.000000e+00> : vector<32x32xf32>
    %18 = tpu.matmul %14, %17, %cst_13 {dimension_numbers = #tpu.dot_dimension_numbers<[1], [0], [0], [1], [0, 0, 1, 1], [], []>} : vector<32x32xf32>, vector<32x32xf32>, vector<32x32xf32> -> vector<32x32xf32>
    %19 = arith.addf %16, %18 : vector<32x32xf32>
    %c0_14 = arith.constant 0 : index
    %c0_15 = arith.constant 0 : index
    %20 = vector.load %arg6[%c0_14, %c0_15] : memref<1x32xf32, #tpu.memory_space<vmem>>, vector<1x32xf32>
    %21 = vector.broadcast %20 : vector<1x32xf32> to vector<32x32xf32>
    %22 = arith.addf %19, %21 : vector<32x32xf32>
    %23 = math.tanh %22 : vector<32x32xf32>
    %24 = vector.shape_cast %23 : vector<32x32xf32> to vector<4x8x32xf32>
    %c0_16 = arith.constant 0 : index
    %c0_17 = arith.constant 0 : index
    %c0_18 = arith.constant 0 : index
    %25 = vector.load %arg7[%c0_16, %c0_17, %c0_18] : memref<4x8x32xf32, #tpu.memory_space<vmem>>, vector<4x8x32xf32>
    tpu.vector_store %arg7[%c0_16, %c0_17, %c0_18], %24 {strides = array<i32>} : memref<4x8x32xf32, #tpu.memory_space<vmem>>, vector<4x8x32xf32>,
    %c0_19 = arith.constant 0 : index
    %c0_20 = arith.constant 0 : index
    %c0_21 = arith.constant 0 : index
    %26 = vector.load %arg8[%c0_19, %c0_20, %c0_21] : memref<4x8x8xf32, #tpu.memory_space<vmem>>, vector<4x8x8xf32>
    tpu.vector_store %arg8[%c0_19, %c0_20, %c0_21], %11 {strides = array<i32>} : memref<4x8x8xf32, #tpu.memory_space<vmem>>, vector<4x8x8xf32>,
    return
  }
  func.func @transform_0(%arg0: i32, %arg1: i32) -> (i32, i32, i32) {
    %c0_i32 = arith.constant 0 : i32
    %c0_i32_0 = arith.constant 0 : i32
    return %arg0, %arg1, %c0_i32 : i32, i32, i32
  }
  func.func @transform_1(%arg0: i32, %arg1: i32) -> (i32, i32, i32) {
    %c0_i32 = arith.constant 0 : i32
    %c0_i32_0 = arith.constant 0 : i32
    %c0_i32_1 = arith.constant 0 : i32
    return %arg0, %c0_i32, %c0_i32_0 : i32, i32, i32
  }
  func.func @transform_2(%arg0: i32, %arg1: i32) -> (i32, i32) {
    %c0_i32 = arith.constant 0 : i32
    %c0_i32_0 = arith.constant 0 : i32
    %c0_i32_1 = arith.constant 0 : i32
    return %c0_i32, %c0_i32_0 : i32, i32
  }
  func.func @transform_3(%arg0: i32, %arg1: i32) -> (i32, i32) {
    %c0_i32 = arith.constant 0 : i32
    %c0_i32_0 = arith.constant 0 : i32
    %c0_i32_1 = arith.constant 0 : i32
    return %c0_i32, %c0_i32_0 : i32, i32
  }
  func.func @transform_4(%arg0: i32, %arg1: i32) -> (i32, i32) {
    %c0_i32 = arith.constant 0 : i32
    %c0_i32_0 = arith.constant 0 : i32
    %c0_i32_1 = arith.constant 0 : i32
    return %c0_i32, %c0_i32_0 : i32, i32
  }
  func.func @transform_5(%arg0: i32, %arg1: i32) -> (i32, i32, i32) {
    %c0_i32 = arith.constant 0 : i32
    %c0_i32_0 = arith.constant 0 : i32
    return %arg0, %arg1, %c0_i32 : i32, i32, i32
  }
  func.func @transform_6(%arg0: i32, %arg1: i32) -> (i32, i32, i32) {
    %c0_i32 = arith.constant 0 : i32
    %c0_i32_0 = arith.constant 0 : i32
    return %arg0, %arg1, %c0_i32 : i32, i32, i32
  }
}

</mosaic_0001>

<bundles_post_ra>
// kernel: tpu_custom_call.1
= control target key start
LH: loop header
LB: loop body
LE: loop exit
PB: predicated region body
PF: predicated region fallthrough
CT: control target
= control target key end

     0   :  { %12 = vsyncpa [#allocation3], 0  ;;  %s1430_s0 = inlined_call_operand.hbm [shape: f32[4,8,32], index: 0, kind: input, shape index: {}]   ;;  %s1431_s1 = inlined_call_operand.hbm [shape: f32[4,8,32], index: 1, kind: input, shape index: {}]   ;;  %s1432_s2 = inlined_call_operand.hbm [shape: f32[32,32], index: 2, kind: input, shape index: {}]   ;;  %s1433_s3 = inlined_call_operand.hbm [shape: f32[32,32], index: 3, kind: input, shape index: {}]   ;;  %s1434_s4 = inlined_call_operand.vmem [shape: f32[1,32], index: 4, kind: input, shape index: {}]   ;;  %s1435_s5 = inlined_call_operand.hbm [shape: f32[4,8,32], index: 5, kind: output, shape index: {0}]   ;;  %s1436_s6 = inlined_call_operand.hbm [shape: f32[4,8,8], index: 6, kind: output, shape index: {1}]  }
   0x1   :  { %13 = vsyncpa [#allocation6], 0 }
   0x2   :  { %14 = vsyncpa [#allocation9], 0 }
   0x3   :  { %15 = vsyncpa [#allocation4], 0 }
   0x4   :  { %16 = vsyncpa [#allocation12], 0  ;;  %s1262_s21 = smov [#allocation5]   ;;  %s1263_s23 = smov [#allocation2]  }
   0x5   :  { %s34_s22 = sshll.u32 %s1262_s21, 4  ;;  %s22_s24 = sshll.u32 %s1263_s23, 4  ;;  %s35_s22 = int_to_ptr.vmem [resolvable:$true] %s34_s22  ;;  %s23_s24 = int_to_ptr.vmem [resolvable:$true] %s22_s24 }
   0x6   :  { %s1140_s25 = scalar_lea.vmem %s35_s22, 512  ;;  %p1145_p1 = scmp.lt.s32.totalorder %s35_s22, %s35_s22 }
   0x7   :  { %p1141_p0 = scmp.ne.s32.totalorder %s35_s22, %s1140_s25  ;;  %p1146_p2 = scmp.lt.s32.totalorder %s1140_s25, %s1140_s25 }
   0x9   :  { %p1147_p3 = por %p1146_p2, %p1145_p1 }
   0xb   :  { %p1148_p4 = pnand %p1147_p3, %p1141_p0 }
   0xd   :  { %1151 = shalt.err (!%p1148_p4)
}
   0xe   :  { %s1264_s26 = smov 128   ;;  %s1265_s27 = smov 8  }
   0xf   :  { %40 = dma.hbm_to_vmem [thread:$0]  %s1431_s1, 512, %s35_s22, [#allocation6], %s1264_s26, %s1264_s26, %s1265_s27  }
  0x10   :  { %s1160_s30 = scalar_lea.vmem %s23_s24, 512  ;;  %p1165_p6 = scmp.lt.s32.totalorder %s23_s24, %s23_s24 }
  0x11   :  { %p1161_p5 = scmp.ne.s32.totalorder %s23_s24, %s1160_s30  ;;  %p1166_p7 = scmp.lt.s32.totalorder %s1160_s30, %s1160_s30 }
  0x13   :  { %p1167_p8 = por %p1166_p7, %p1165_p6 }
  0x15   :  { %p1168_p9 = pnand %p1167_p8, %p1161_p5 }
  0x17   :  { %1171 = shalt.err (!%p1168_p9)
}
  0x18   :  { %28 = dma.hbm_to_vmem [thread:$0]  %s1430_s0, 512, %s23_s24, [#allocation3], %s1264_s26, %s1264_s26, %s1265_s27  }
  0x19   :  { %s1266_s9 = smov [#allocation7]   ;;  %s1267_s11 = smov [#allocation8]  }
  0x1a   :  { %s46_s10 = sshll.u32 %s1266_s9, 4  ;;  %s58_s12 = sshll.u32 %s1267_s11, 4  ;;  %s47_s10 = int_to_ptr.vmem [resolvable:$true] %s46_s10  ;;  %s59_s12 = int_to_ptr.vmem [resolvable:$true] %s58_s12 }
  0x1b   :  { %s1180_s1 = scalar_lea.vmem %s47_s10, 512  ;;  %p1185_p11 = scmp.lt.s32.totalorder %s47_s10, %s47_s10 }
  0x1c   :  { %p1181_p10 = scmp.ne.s32.totalorder %s47_s10, %s1180_s1  ;;  %p1186_p12 = scmp.lt.s32.totalorder %s1180_s1, %s1180_s1 }
  0x1e   :  { %p1187_p13 = por %p1186_p12, %p1185_p11 }
  0x20   :  { %p1188_p0 = pnand %p1187_p13, %p1181_p10 }
  0x22   :  { %1191 = shalt.err (!%p1188_p0)
}
  0x23   :  { %52 = dma.hbm_to_vmem [thread:$0]  %s1432_s2, 512, %s47_s10, [#allocation6], %s1264_s26, %s1264_s26, %s1265_s27  }
  0x24   :  { %s1200_s0 = scalar_lea.vmem %s59_s12, 512  ;;  %p1205_p2 = scmp.lt.s32.totalorder %s59_s12, %s59_s12 }
  0x25   :  { %p1201_p1 = scmp.ne.s32.totalorder %s59_s12, %s1200_s0  ;;  %p1206_p3 = scmp.lt.s32.totalorder %s1200_s0, %s1200_s0 }
  0x27   :  { %p1207_p4 = por %p1206_p3, %p1205_p2 }
  0x29   :  { %p1208_p5 = pnand %p1207_p4, %p1201_p1 }
  0x2b   :  { %1211 = shalt.err (!%p1208_p5)
}
  0x2c   :  { %64 = dma.hbm_to_vmem [thread:$0]  %s1433_s3, 512, %s59_s12, [#allocation9], %s1264_s26, %s1264_s26, %s1265_s27  }
  0x2d   :  { %1252 = dma.done.wait [#allocation3], 512  }
  0x2e   :  { %1253 = vsyncadd [#allocation3], 4294966784 }
  0x2f   :  { %1254 = dma.done.wait [#allocation6], 1024  }
  0x30   :  { %1255 = vsyncadd [#allocation6], 4294966272 }
  0x31   :  { %1256 = dma.done.wait [#allocation9], 512  }
  0x32   :  { %1257 = vsyncadd [#allocation9], 4294966784  ;;  %v1268_v0 = vmov 0.0   ;;  %vm1269_vm0 = vmmov 0   ;;  %vm87_vm1 = vcmask 261120   ;;  %v83_v1 = vld [vmem:[#allocation5] sm:$0xff] }
  0x33   :  { %1030 = vmatprep.subr.mxu0 %v1268_v0  ;;  %1032 = vmatprep.mubr.msk.f32.mxu0 %vm1269_vm0, %v1268_v0  ;;  %v84_v2 = vld [vmem:[#allocation5 + $0x8] sm:$0xff]  ;;  %v1338_v3 = vld [vmem:[#allocation2] sm:$0xff]  ;;  %v1344_v5 = vld [vmem:[#allocation5 + $0x10] sm:$0xff]  ;;  %vm392_vm2 = vcmask 64512   ;;  %s1270_s2 = smov [#allocation11]  }
  0x34   :  { %1035 = vmatprep.subr.mxu1 %v1268_v0  ;;  %1037 = vmatprep.mubr.msk.f32.mxu1 %vm1269_vm0, %v1268_v0  ;;  %v1341_v4 = vld [vmem:[#allocation2 + $0x8] sm:$0xff]  ;;  %v1347_v6 = vld [vmem:[#allocation5 + $0x18] sm:$0xff]  ;;  %v1357_v7 = vld [vmem:[#allocation2 + $0x10] sm:$0xff]  ;;  %s959_s3 = sshll.u32 %s1270_s2, 4  ;;  %s960_s3 = int_to_ptr.vmem [resolvable:$true] %s959_s3 }
  0x35   :  { %1031 = vmatpush3.xpose.msk.msra.mxu0 %vm87_vm1, %v83_v1  ;;  %1036 = vmatpush3.xpose.msk.msra.mxu1 %vm87_vm1, %v84_v2  ;;  %v1363_v8 = vld [vmem:[#allocation2 + $0x18] sm:$0xff]  ;;  %v735_v53 = vld [vmem:[#allocation8 + $0x10] sm:$0xff]  ;;  %v734_v57 = vld [vmem:[#allocation8 + $0x8] sm:$0xff]  ;;  %s1212_s17 = scalar_lea.vmem %s960_s3, 512  ;;  %p1217_p7 = scmp.lt.s32.totalorder %s960_s3, %s960_s3 }
  0x36   :  { %1040 = vmatprep.subr.mxu0 %v1268_v0  ;;  %1045 = vmatprep.subr.mxu1 %v1268_v0  ;;  %v736_v47 = vld [vmem:[#allocation8 + $0x18] sm:$0xff]  ;;  %v731_v56 = vld [vmem:[#allocation7 + $0x10] sm:$0xff]  ;;  %v730_v58 = vld [vmem:[#allocation7 + $0x8] sm:$0xff]  ;;  %p1213_p6 = scmp.ne.s32.totalorder %s960_s3, %s1212_s17  ;;  %p1218_p8 = scmp.lt.s32.totalorder %s1212_s17, %s1212_s17 }
  0x37   :  { %v732_v52 = vld [vmem:[#allocation7 + $0x18] sm:$0xff]  ;;  %v733_v59 = vld [vmem:[#allocation8] sm:$0xff] }
  0x38   :  { %1033 = vmatmul.mubr.msk.f32.vlgmr.msra.gmra.mxu0 %vm87_vm1, %v1338_v3  ;;  %1038 = vmatmul.mubr.msk.f32.vlgmr.msra.gmra.mxu1 %vm87_vm1, %v1341_v4  ;;  %v729_v60 = vld [vmem:[#allocation7] sm:$0xff]  ;;  %p1219_p9 = por %p1218_p8, %p1217_p7 }
  0x39   :  { %1041 = vmatpush3.xpose.msk.msra.mxu0 %vm87_vm1, %v1344_v5  ;;  %1042 = vmatprep.mubr.msk.f32.mxu0 %vm1269_vm0, %v1268_v0 }
  0x3a   :  { %1046 = vmatpush3.xpose.msk.msra.mxu1 %vm87_vm1, %v1347_v6  ;;  %1047 = vmatprep.mubr.msk.f32.mxu1 %vm1269_vm0, %v1268_v0  ;;  %p1220_p10 = pnand %p1219_p9, %p1213_p6 }
  0x3b   :  { %1050 = vmatprep.subr.mxu0 %v1268_v0  ;;  %1055 = vmatprep.subr.mxu1 %v1268_v0 }
  0x3c   :  { %1043 = vmatmul.mubr.msk.f32.vlgmr.msra.gmra.mxu0 %vm87_vm1, %v1357_v7 }
  0x3d   :  { %1048 = vmatmul.mubr.msk.f32.vlgmr.msra.gmra.mxu1 %vm87_vm1, %v1363_v8  ;;  %1051 = vmatpush3.msra.mxu0 %v83_v1 }
  0x3e   :  { %1052 = vmatprep.mubr.msk.f32.mxu0 %vm1269_vm0, %v1268_v0  ;;  %1056 = vmatpush3.msra.mxu1 %v84_v2 }
  0x3f   :  { %1060 = vmatprep.subr.mxu0 %v1268_v0  ;;  %1057 = vmatprep.mubr.msk.f32.mxu1 %vm1269_vm0, %v1268_v0 }
  0x40   :  { %1065 = vmatprep.subr.mxu1 %v1268_v0 }
  0xf8   :  { %v160_v9 = vpop.f32.mrf.mxu0  ;;  %v236_v10 = vpop.f32.mrf.mxu1 }
  0xf9   :  { %v393_v11 = vsel %vm392_vm2, %v160_v9, -inf  ;;  %v396_v14 = vsel %vm392_vm2, %v236_v10, -inf }
  0xfa   :  { %394 = vmax.xlane.f32.xlu0 %v393_v11  ;;  %v1034_v12 = vpop.f32.mrf.mxu0  ;;  %v1039_v13 = vpop.f32.mrf.mxu1 }
  0xfc   :  { %v312_v15 = vpop.f32.mrf.mxu0 }
  0xfd   :  { %v399_v16 = vsel %vm392_vm2, %v312_v15, -inf  ;;  %v388_v17 = vpop.f32.mrf.mxu1 }
  0xfe   :  { %397 = vmax.xlane.f32.xlu0 %v396_v14  ;;  %400 = vmax.xlane.f32.xlu1 %v399_v16  ;;  %v1044_v18 = vpop.f32.mrf.mxu0  ;;  %v402_v20 = vsel %vm392_vm2, %v388_v17, -inf }
  0xff   :  { %v1049_v19 = vpop.f32.mrf.mxu1 }
 0x102   :  { %403 = vmax.xlane.f32.xlu1 %v402_v20 }
 0x183   :  { %v395_v21 = vpop.xlane.xlu0 %394 }
 0x184   :  { %v405_v22 = vsub.f32 %v160_v9, %v395_v21 }
 0x186   :  { %v409_v23 = vmul.f32 1.442695, %v405_v22 }
 0x187   :  { %v398_v24 = vpop.xlane.xlu0 %397  ;;  %v401_v25 = vpop.xlane.xlu1 %400 }
 0x188   :  { %1108 = vpow2.f32 %v409_v23  ;;  %v406_v26 = vsub.f32 %v236_v10, %v398_v24  ;;  %v407_v27 = vsub.f32 %v312_v15, %v401_v25 }
 0x18a   :  { %v411_v28 = vmul.f32 1.442695, %v406_v26  ;;  %v413_v29 = vmul.f32 1.442695, %v407_v27 }
 0x18b   :  { %v404_v30 = vpop.xlane.xlu1 %403 }
 0x18c   :  { %1110 = vpow2.f32 %v411_v28  ;;  %v408_v31 = vsub.f32 %v388_v17, %v404_v30 }
 0x18d   :  { %1112 = vpow2.f32 %v413_v29 }
 0x18e   :  { %v415_v32 = vmul.f32 1.442695, %v408_v31 }
 0x190   :  { %1114 = vpow2.f32 %v415_v32 }
 0x195   :  { %v1109_v33 = vpop.eup %1108 }
 0x196   :  { %v417_v34 = vsel %vm392_vm2, %v1109_v33, 0.0 }
 0x197   :  { %418 = vadd.xlane.f32.xlu0 %v417_v34 }
 0x199   :  { %v1111_v35 = vpop.eup %1110 }
 0x19a   :  { %v1113_v36 = vpop.eup %1112  ;;  %v420_v37 = vsel %vm392_vm2, %v1111_v35, 0.0 }
 0x19b   :  { %421 = vadd.xlane.f32.xlu1 %v420_v37  ;;  %v423_v38 = vsel %vm392_vm2, %v1113_v36, 0.0 }
 0x19c   :  { %424 = vadd.xlane.f32.xlu0 %v423_v38 }
 0x19d   :  { %v1115_v39 = vpop.eup %1114 }
 0x19e   :  { %v426_v40 = vsel %vm392_vm2, %v1115_v39, 0.0 }
 0x19f   :  { %427 = vadd.xlane.f32.xlu1 %v426_v40 }
 0x220   :  { %v419_v41 = vpop.xlane.xlu0 %418 }
 0x221   :  { %1116 = vrcp.f32 %v419_v41 }
 0x224   :  { %v422_v42 = vpop.xlane.xlu1 %421 }
 0x225   :  { %v425_v43 = vpop.xlane.xlu0 %424  ;;  %1118 = vrcp.f32 %v422_v42 }
 0x226   :  { %1120 = vrcp.f32 %v425_v43 }
 0x228   :  { %v428_v44 = vpop.xlane.xlu1 %427 }
 0x229   :  { %1122 = vrcp.f32 %v428_v44 }
 0x22e   :  { %v1117_v45 = vpop.eup %1116 }
 0x22f   :  { %v430_v46 = vmul.f32 %v1117_v45, %v1109_v33 }
 0x231   :  { %1053 = vmatmul.mubr.msk.f32.vlgmr.msra.gmra.mxu0 %vm392_vm2, %v430_v46  ;;  %938 = vst.msk [vmem:[#allocation11] sm:$0xff] %vm392_vm2, %v430_v46 }
 0x232   :  { %v1119_v48 = vpop.eup %1118  ;;  %1061 = vmatpush3.msra.mxu0 %v1344_v5  ;;  %1062 = vmatprep.mubr.msk.f32.mxu0 %vm1269_vm0, %v1268_v0 }
 0x233   :  { %v1121_v49 = vpop.eup %1120  ;;  %v432_v50 = vmul.f32 %v1119_v48, %v1111_v35  ;;  %1070 = vmatprep.subr.mxu0 %v736_v47 }
 0x234   :  { %v434_v51 = vmul.f32 %v1121_v49, %v1113_v36 }
 0x235   :  { %1058 = vmatmul.mubr.msk.f32.vlgmr.msra.gmra.mxu1 %vm392_vm2, %v432_v50  ;;  %939 = vst.msk [vmem:[#allocation11 + $0x8] sm:$0xff] %vm392_vm2, %v432_v50 }
 0x236   :  { %v1123_v54 = vpop.eup %1122  ;;  %1063 = vmatmul.mubr.msk.f32.vlgmr.msra.gmra.mxu0 %vm392_vm2, %v434_v51  ;;  %940 = vst.msk [vmem:[#allocation11 + $0x10] sm:$0xff] %vm392_vm2, %v434_v51  ;;  %1066 = vmatpush3.msra.mxu1 %v1347_v6 }
 0x237   :  { %1067 = vmatprep.mubr.msk.f32.mxu1 %vm1269_vm0, %v1268_v0  ;;  %v436_v55 = vmul.f32 %v1123_v54, %v1115_v39  ;;  %1071 = vmatpush3.msra.mxu0 %v736_v47 }
 0x238   :  { %1084 = vmatprep.subr.mxu1 %v732_v52  ;;  %1072 = vmatprep.subr.mxu0 %v735_v53 }
 0x239   :  { %1068 = vmatmul.mubr.msk.f32.vlgmr.msra.gmra.mxu1 %vm392_vm2, %v436_v55  ;;  %941 = vst.msk [vmem:[#allocation11 + $0x18] sm:$0xff] %vm392_vm2, %v436_v55  ;;  %1073 = vmatpush3.msra.mxu0 %v735_v53 }
 0x23a   :  { %1085 = vmatpush3.msra.mxu1 %v732_v52  ;;  %1078 = vmatprep.mubr.msk.f32.mxu0 %vm87_vm1, %v1338_v3 }
 0x23b   :  { %1086 = vmatprep.subr.mxu1 %v731_v56  ;;  %1074 = vmatprep.subr.mxu0 %v734_v57 }
 0x23c   :  { %1087 = vmatpush3.msra.mxu1 %v731_v56  ;;  %1075 = vmatpush3.msra.mxu0 %v734_v57 }
 0x23d   :  { %1088 = vmatprep.subr.mxu1 %v730_v58  ;;  %1076 = vmatprep.subr.mxu0 %v733_v59 }
 0x23e   :  { %1089 = vmatpush3.msra.mxu1 %v730_v58  ;;  %1077 = vmatpush3.msra.mxu0 %v733_v59 }
 0x23f   :  { %1090 = vmatprep.subr.mxu1 %v729_v60  ;;  %1079 = vmatmul.mubr.msk.f32.vlgmr.msra.gmra.mxu0 %vm87_vm1, %v1341_v4 }
 0x240   :  { %1091 = vmatpush3.msra.mxu1 %v729_v60  ;;  %1081 = vmatprep.mubr.msk.f32.mxu0 %vm87_vm1, %v1357_v7 }
 0x243   :  { %1082 = vmatmul.mubr.msk.f32.gmra.mxu0 %vm87_vm1, %v1363_v8 }
 0x2f1   :  { %v506_v61 = vpop.f32.mrf.mxu0 }
 0x2f2   :  { %1092 = vmatprep.mubr.msk.f32.mxu1 %vm87_vm1, %v506_v61 }
 0x2f3   :  { %v1054_v62 = vpop.f32.mrf.mxu0 }
 0x2f5   :  { %v579_v63 = vpop.f32.mrf.mxu1 }
 0x2f6   :  { %v652_v0 = vpop.f32.mrf.mxu0  ;;  %1093 = vmatmul.mubr.msk.f32.vlgmr.msra.gmra.mxu1 %vm87_vm1, %v579_v63 }
 0x2f7   :  { %v1059_v1 = vpop.f32.mrf.mxu1  ;;  %1095 = vmatprep.mubr.msk.f32.mxu1 %vm87_vm1, %v652_v0 }
 0x2f8   :  { %v1064_v2 = vpop.f32.mrf.mxu0 }
 0x2f9   :  { %v725_v3 = vpop.f32.mrf.mxu1 }
 0x2fa   :  { %1096 = vmatmul.mubr.msk.f32.gmra.mxu1 %vm87_vm1, %v725_v3 }
 0x2fb   :  { %v1069_v4 = vpop.f32.mrf.mxu1 }
 0x2fc   :  { %1223 = shalt.err (!%p1220_p10)
}
 0x2fd   :  { %965 = dma.vmem_to_hbm [thread:$0]  %s960_s3, 512, %s1436_s6, [#allocation12], %s1264_s26, %s1264_s26, %s1265_s27  }
 0x2fe   :  { %v997_v8 = vld [vmem:[%s1434_s4] ss:$0 sm:$0xff]  ;;  %s1271_s4 = smov [#allocation10]  }
 0x2ff   :  { %v1080_v5 = vpop.f32.mrf.mxu0  ;;  %s947_s6 = sshll.u32 %s1271_s4, 4  ;;  %s948_s6 = int_to_ptr.vmem [resolvable:$true] %s947_s6 }
 0x300   :  { %s1232_s22 = scalar_lea.vmem %s948_s6, 512  ;;  %p1237_p12 = scmp.lt.s32.totalorder %s948_s6, %s948_s6 }
 0x301   :  { %v803_v6 = vpop.f32.mrf.mxu0  ;;  %p1233_p11 = scmp.ne.s32.totalorder %s948_s6, %s1232_s22  ;;  %p1238_p13 = scmp.lt.s32.totalorder %s1232_s22, %s1232_s22 }
 0x303   :  { %v1083_v11 = vpop.f32.mrf.mxu0  ;;  %p1239_p0 = por %p1238_p13, %p1237_p12 }
 0x305   :  { %v813_v17 = vpop.f32.mrf.mxu0  ;;  %p1240_p1 = pnand %p1239_p0, %p1233_p11 }
 0x3b6   :  { %v1094_v7 = vpop.f32.mrf.mxu1 }
 0x3b7   :  { %v906_v9 = vadd.f32 %v1094_v7, %v1080_v5 }
 0x3b8   :  { %v900_v10 = vpop.f32.mrf.mxu1 }
 0x3b9   :  { %v927_v12 = vadd.f32 %v997_v8, %v906_v9  ;;  %v901_v13 = vadd.f32 %v900_v10, %v803_v6 }
 0x3ba   :  { %v1097_v14 = vpop.f32.mrf.mxu1 }
 0x3bb   :  { %1124 = vtanh.f32 %v927_v12  ;;  %v926_v15 = vadd.f32 %v997_v8, %v901_v13  ;;  %v916_v16 = vadd.f32 %v1097_v14, %v1083_v11 }
 0x3bc   :  { %v910_v18 = vpop.f32.mrf.mxu1 }
 0x3bd   :  { %1126 = vtanh.f32 %v926_v15  ;;  %v929_v19 = vadd.f32 %v997_v8, %v916_v16  ;;  %v911_v20 = vadd.f32 %v910_v18, %v813_v17 }
 0x3bf   :  { %1128 = vtanh.f32 %v929_v19  ;;  %v928_v21 = vadd.f32 %v997_v8, %v911_v20 }
 0x3c1   :  { %1130 = vtanh.f32 %v928_v21 }
 0x3c8   :  { %v1125_v22 = vpop.eup %1124 }
 0x3c9   :  { %935 = vst.msk [vmem:[#allocation10 + $0x8] sm:$0xff] %vm87_vm1, %v1125_v22 }
 0x3ca   :  { %v1127_v23 = vpop.eup %1126 }
 0x3cb   :  { %934 = vst.msk [vmem:[#allocation10] sm:$0xff] %vm87_vm1, %v1127_v23 }
 0x3cc   :  { %v1129_v24 = vpop.eup %1128 }
 0x3cd   :  { %937 = vst.msk [vmem:[#allocation10 + $0x18] sm:$0xff] %vm87_vm1, %v1129_v24 }
 0x3ce   :  { %v1131_v25 = vpop.eup %1130 }
 0x3cf   :  { %936 = vst.msk [vmem:[#allocation10 + $0x10] sm:$0xff] %vm87_vm1, %v1131_v25 }
 0x3d0   :  { %1243 = shalt.err (!%p1240_p1)
}
 0x3d1   :  { %953 = dma.vmem_to_hbm [thread:$0]  %s948_s6, 512, %s1435_s5, [#allocation4], %s1264_s26, %s1264_s26, %s1265_s27  }
 0x3d2   :  { %1258 = dma.done.wait [#allocation4], 512  }
 0x3d3   :  { %1259 = vsyncadd [#allocation4], 4294966784 }
 0x3d4   :  { %1260 = dma.done.wait [#allocation12], 512  }
 0x3d5   :  { %1261 = vsyncadd [#allocation12], 4294966784 }
 0x3d6   :  { %972 = vsyncpa [#allocation3], 1 }
 0x3d7   :  { %973 = vsyncpa [#allocation6], 1 }
 0x3d8   :  { %974 = vsyncpa [#allocation9], 1 }
 0x3d9   :  { %975 = vsyncpa [#allocation4], 1 }
 0x3da   :  { %976 = vsyncpa [#allocation12], 1 }

</bundles_post_ra>
